<compile_context>
chip_gen: v6e
topology: v6e:2x2x1
jax: 0.10.0
libtpu: 0.0.40
codegen_flags: <defaults>
</compile_context>

<pallas_src>
import jax
import jax.numpy as jnp
from jax.experimental import pallas as pl
from jax.experimental.pallas import tpu as pltpu


def dhead_kernel(x_ref, w_ref, b_ref, o_ref):
    """sigmoid(x @ w + b) as VPU multiply + XLU lane-reduce (no MXU).

    x_ref: (M_pad, K) f32 VMEM   input rows (im2col'd / reshaped)
    w_ref: (1, K)     f32 VMEM   flattened conv weight, (c, kh, kw) order
    b_ref: (1,)       f32 SMEM   bias scalar
    o_ref: (M_pad, 1) f32 VMEM   sigmoid(conv) per row
    """
    prod = x_ref[...] * w_ref[...]                         # VPU mul, sublane-broadcast of w
    z = jnp.sum(prod, axis=1, keepdims=True) + b_ref[0]    # XLU lane reduce -> (M_pad, 1)
    # exp goes to EUP; exact reciprocal keeps the f32-accurate sigmoid.
    o_ref[...] = pl.reciprocal(1.0 + jnp.exp(-z), approx=False).astype(o_ref.dtype)


def _im2col_nchw(x, kh, kw):
    """General [N, C, H, W] -> [N*OH*OW, C*kh*kw] (column order (c, kh, kw)).

    Only used when OH/OW > 1; the canonical DHead case (H==KH, W==KW) is a
    zero-copy reshape handled in dhead_forward.
    """
    n, c, h, w = x.shape
    oh, ow = h - kh + 1, w - kw + 1
    patches = []
    for i in range(kh):
        for j in range(kw):
            patches.append(x[:, :, i:i + oh, j:j + ow])     # [N, C, OH, OW]
    p = jnp.stack(patches, axis=2).reshape(n, c, kh, kw, oh, ow)
    p = p.transpose(0, 4, 5, 1, 2, 3).reshape(n * oh * ow, c * kh * kw)
    return p, oh, ow


@jax.jit
def dhead_forward(x, weight, bias):
    """Pallas implementation of DHead.forward: sigmoid(conv2d(x, W, b)), NCHW/OIHW."""
    n, c, h, w = x.shape
    c_out, c_in, kh, kw = weight.shape
    assert c_out == 1 and c_in == c

    oh, ow = h - kh + 1, w - kw + 1
    if oh == 1 and ow == 1:
        # Canonical DHead: the patch is the whole feature map, so im2col is a
        # zero-copy reshape; (c, h, w) flatten order == (c, kh, kw) == OIHW flatten.
        x_col = x.reshape(n, c * kh * kw)
    else:
        x_col, oh, ow = _im2col_nchw(x, kh, kw)

    m, k_dim = x_col.shape
    assert k_dim % 128 == 0, "K = C*KH*KW must be lane-aligned (multiple of 128)"

    # Pad rows up to a sublane multiple (>=8) so the (M_pad, K) slab isn't mostly padding.
    m_pad = max(8, ((m + 7) // 8) * 8)
    if m_pad != m:
        x_col = jnp.pad(x_col, ((0, m_pad - m), (0, 0)))

    x_col = x_col.astype(jnp.float32)
    w_row = weight.reshape(1, c * kh * kw).astype(jnp.float32)   # (1, K)
    b1 = bias.reshape(1).astype(jnp.float32)                     # (1,) scalar -> SMEM

    out = pl.pallas_call(
        dhead_kernel,
        out_shape=jax.ShapeDtypeStruct((m_pad, 1), jnp.float32),
        in_specs=[
            pl.BlockSpec(memory_space=pltpu.MemorySpace.VMEM),   # x_col (whole array)
            pl.BlockSpec(memory_space=pltpu.MemorySpace.VMEM),   # w_row (whole array)
            pl.BlockSpec(memory_space=pltpu.MemorySpace.SMEM),   # bias scalar
        ],
        out_specs=pl.BlockSpec(memory_space=pltpu.MemorySpace.VMEM),
        cost_estimate=pl.CostEstimate(
            flops=2 * m_pad * k_dim,
            transcendentals=m_pad,
            bytes_accessed=4 * (m_pad * k_dim + k_dim + m_pad),
        ),
    )(x_col, w_row, b1)

    # (M_pad, 1) -> drop padded rows -> [N, 1, OH, OW] (NCHW, matching PyTorch).
    return out[:m, 0].reshape(n, oh, ow)[:, None, :, :].astype(x.dtype)


if __name__ == "__main__":
    key = jax.random.PRNGKey(0)
    kx, kw_, kb = jax.random.split(key, 3)

    # Shapes implied by the module: Conv2d(1024, 1, 4) over a 4x4 feature map.
    N, C, H, W = 2, 1024, 4, 4
    KH = KW = 4
    x = jax.random.normal(kx, (N, C, H, W), dtype=jnp.float32)

    # Deterministic synthetic params (PyTorch-default-like uniform bounds).
    fan_in = C * KH * KW
    bound = 1.0 / jnp.sqrt(fan_in)
    weight = jax.random.uniform(kw_, (1, C, KH, KW), jnp.float32, -bound, bound)
    bias = jax.random.uniform(kb, (1,), jnp.float32, -bound, bound)

    y = dhead_forward(x, weight, bias)
    y = jax.block_until_ready(y)

    # Pure-JAX reference (lax conv) for a correctness sanity check.
    ref = jax.lax.conv_general_dilated(
        x, weight, window_strides=(1, 1), padding="VALID",
        dimension_numbers=("NCHW", "OIHW", "NCHW"))
    ref = 1.0 / (1.0 + jnp.exp(-(ref + bias.reshape(1, 1, 1, 1))))

    assert y.shape == (N, 1, H - KH + 1, W - KW + 1), y.shape
    assert jnp.allclose(y, ref, rtol=1e-4, atol=1e-5), (y, ref)
    print("KERNEL_OK")
</pallas_src>

<mosaic_0001>
module attributes {stable_mosaic.version = 11 : i64} {
  func.func @dhead_kernel(%arg0: memref<8x16384xf32, #tpu.memory_space<vmem>>, %arg1: memref<1x16384xf32, #tpu.memory_space<vmem>>, %arg2: memref<1xf32, #tpu.memory_space<smem>>, %arg3: memref<8x1xf32, #tpu.memory_space<vmem>>) attributes {dimension_semantics = [], scalar_prefetch = 0 : i64, scratch_operands = 0 : i64, tpu.core_type = #tpu.core_type<tc>} {
    %c0 = arith.constant 0 : index
    %c0_0 = arith.constant 0 : index
    %0 = vector.load %arg0[%c0, %c0_0] : memref<8x16384xf32, #tpu.memory_space<vmem>>, vector<8x16384xf32>
    %c0_1 = arith.constant 0 : index
    %c0_2 = arith.constant 0 : index
    %1 = vector.load %arg1[%c0_1, %c0_2] : memref<1x16384xf32, #tpu.memory_space<vmem>>, vector<1x16384xf32>
    %2 = vector.broadcast %1 : vector<1x16384xf32> to vector<8x16384xf32>
    %3 = arith.mulf %0, %2 : vector<8x16384xf32>
    %cst = arith.constant dense<0.000000e+00> : vector<8xf32>
    %4 = vector.multi_reduction <add>, %3, %cst [1] : vector<8x16384xf32> to vector<8xf32>
    %5 = vector.shape_cast %4 : vector<8xf32> to vector<8x1xf32>
    %c0_3 = arith.constant 0 : index
    %6 = memref.load %arg2[%c0_3] : memref<1xf32, #tpu.memory_space<smem>>
    %7 = vector.broadcast %6 : f32 to vector<8x1xf32>
    %8 = arith.addf %5, %7 : vector<8x1xf32>
    %cst_4 = arith.constant 0.000000e+00 : f32
    %9 = vector.broadcast %cst_4 : f32 to vector<8x1xf32>
    %10 = arith.subf %9, %8 : vector<8x1xf32>
    %11 = math.exp %10 : vector<8x1xf32>
    %cst_5 = arith.constant 1.000000e+00 : f32
    %12 = vector.broadcast %cst_5 : f32 to vector<8x1xf32>
    %13 = arith.addf %12, %11 : vector<8x1xf32>
    %14 = tpu.reciprocal %13 : vector<8x1xf32> -> vector<8x1xf32>
    %c0_6 = arith.constant 0 : index
    %c0_7 = arith.constant 0 : index
    %15 = vector.load %arg3[%c0_6, %c0_7] : memref<8x1xf32, #tpu.memory_space<vmem>>, vector<8x1xf32>
    tpu.vector_store %arg3[%c0_6, %c0_7], %14 {strides = array<i32>} : memref<8x1xf32, #tpu.memory_space<vmem>>, vector<8x1xf32>,
    return
  }
}

</mosaic_0001>

<bundles_post_ra>
// kernel: dhead_forward.1
= control target key start
LH: loop header
LB: loop body
LE: loop exit
PB: predicated region body
PF: predicated region fallthrough
CT: control target
= control target key end

     0   :  { %v175_v0 = vlaneseq  ;;  %vm1080_vm0 = vcmask 7168   ;;  %s2386_s1 = inlined_call_operand.vmem [shape: f32[1,16384], index: 1, kind: input, shape index: {}]   ;;  %s2387_s0 = inlined_call_operand.vmem [shape: f32[8,16384], index: 0, kind: input, shape index: {}]   ;;  %s2388_s2 = inlined_call_operand.<no memory space> [shape: f32[1], index: 2, kind: input, shape index: {}]   ;;  %s2389_s3 = inlined_call_operand.vmem [shape: f32[8,1], index: 3, kind: output, shape index: {}]  }
   0x1   :  { %v1113_v2 = vld [vmem:[%s2386_s1 + $0x28] sm:$0xff]  ;;  %v1126_v7 = vld [vmem:[%s2386_s1 + $0x30] sm:$0xff]  ;;  %v1147_v16 = vld [vmem:[%s2386_s1 + $0x38] sm:$0xff] }
   0x2   :  { %v176_v1 = vshrl.u32 %v175_v0, 7  ;;  %v1168_v25 = vld [vmem:[%s2386_s1 + $0x40] sm:$0xff]  ;;  %v1189_v34 = vld [vmem:[%s2386_s1 + $0x48] sm:$0xff]  ;;  %v1210_v43 = vld [vmem:[%s2386_s1 + $0x50] sm:$0xff] }
   0x3   :  { %v1231_v52 = vld [vmem:[%s2386_s1 + $0x58] sm:$0xff]  ;;  %v1252_v61 = vld [vmem:[%s2386_s1 + $0x60] sm:$0xff]  ;;  %v1273_v63 = vld [vmem:[%s2386_s1 + $0x68] sm:$0xff] }
   0x4   :  { %v1115_v3 = vsub.s32 0, %v176_v1  ;;  %v1117_v4 = vsub.s32 1, %v176_v1  ;;  %v1119_v5 = vsub.s32 2, %v176_v1  ;;  %v1121_v6 = vsub.s32 3, %v176_v1  ;;  %v1294_v60 = vld [vmem:[%s2386_s1 + $0x70] sm:$0xff]  ;;  %v1315_v62 = vld [vmem:[%s2386_s1 + $0x78] sm:$0xff] }
   0x5   :  { %v1128_v8 = vsub.s32 4, %v176_v1  ;;  %v1130_v9 = vsub.s32 5, %v176_v1  ;;  %v1132_v10 = vsub.s32 6, %v176_v1  ;;  %v1134_v11 = vsub.s32 7, %v176_v1  ;;  %v1360_v55 = vld [vmem:[%s2386_s1] sm:$0xff]  ;;  %v16_v59 = vld [vmem:[%s2387_s0 + $0x8] sm:$0xff] }
   0x6   :  { %v338_v12 = vrot.slane %v1113_v2, %v1115_v3  ;;  %v342_v13 = vrot.slane %v1113_v2, %v1117_v4  ;;  %v15_v1 = vld [vmem:[%s2387_s0] sm:$0xff]  ;;  %v17_v58 = vld [vmem:[%s2387_s0 + $0x10] sm:$0xff]  ;;  %v48_v0 = vld [vmem:[%s2387_s0 + $0x108] sm:$0xff]  ;;  %v178_v53 = vrot.slane %v1360_v55, %v1115_v3  ;;  %v182_v51 = vrot.slane %v1360_v55, %v1117_v4 }
   0x7   :  { %v49_v56 = vld [vmem:[%s2387_s0 + $0x110] sm:$0xff]  ;;  %v50_v57 = vld [vmem:[%s2387_s0 + $0x118] sm:$0xff]  ;;  %v1383_v54 = vld [vmem:[%s2386_s1 + $0x20] sm:$0xff]  ;;  %v186_v46 = vrot.slane %v1360_v55, %v1119_v5 }
   0x8   :  { %v51_v50 = vld [vmem:[%s2387_s0 + $0x120] sm:$0xff]  ;;  %v52_v49 = vld [vmem:[%s2387_s0 + $0x128] sm:$0xff]  ;;  %v53_v48 = vld [vmem:[%s2387_s0 + $0x130] sm:$0xff]  ;;  %v310_v45 = vrot.slane %v1383_v54, %v1117_v4  ;;  %v314_v44 = vrot.slane %v1383_v54, %v1119_v5  ;;  %v318_v42 = vrot.slane %v1383_v54, %v1121_v6  ;;  %v322_v37 = vrot.slane %v1383_v54, %v1128_v8 }
   0x9   :  { %v54_v47 = vld [vmem:[%s2387_s0 + $0x138] sm:$0xff]  ;;  %v55_v41 = vld [vmem:[%s2387_s0 + $0x140] sm:$0xff]  ;;  %v56_v40 = vld [vmem:[%s2387_s0 + $0x148] sm:$0xff]  ;;  %v326_v36 = vrot.slane %v1383_v54, %v1130_v9  ;;  %v330_v35 = vrot.slane %v1383_v54, %v1132_v10  ;;  %v334_v33 = vrot.slane %v1383_v54, %v1134_v11  ;;  %v1457_v21 = vmul.f32 %v178_v53, %v15_v1 }
   0xa   :  { %v57_v39 = vld [vmem:[%s2387_s0 + $0x150] sm:$0xff]  ;;  %v58_v38 = vld [vmem:[%s2387_s0 + $0x158] sm:$0xff]  ;;  %v59_v32 = vld [vmem:[%s2387_s0 + $0x160] sm:$0xff]  ;;  %v1459_v20 = vmul.f32 %v182_v51, %v16_v59  ;;  %v1473_v53 = vmul.f32 %v186_v46, %v17_v58  ;;  %v1475_v51 = vmul.f32 %v310_v45, %v48_v0  ;;  %v1477_v59 = vmul.f32 %v314_v44, %v49_v56 }
   0xb   :  { %v60_v31 = vld [vmem:[%s2387_s0 + $0x168] sm:$0xff]  ;;  %v61_v30 = vld [vmem:[%s2387_s0 + $0x170] sm:$0xff]  ;;  %v62_v29 = vld [vmem:[%s2387_s0 + $0x178] sm:$0xff]  ;;  %v1479_v1 = vmul.f32 %v318_v42, %v50_v57  ;;  %v1493_v44 = vmul.f32 %v322_v37, %v51_v50  ;;  %v1495_v42 = vmul.f32 %v326_v36, %v52_v49  ;;  %v1497_v46 = vmul.f32 %v330_v35, %v53_v48 }
   0xc   :  { %v63_v28 = vld [vmem:[%s2387_s0 + $0x180] sm:$0xff]  ;;  %v64_v27 = vld [vmem:[%s2387_s0 + $0x188] sm:$0xff]  ;;  %v65_v26 = vld [vmem:[%s2387_s0 + $0x190] sm:$0xff]  ;;  %v1499_v56 = vmul.f32 %v334_v33, %v54_v47  ;;  %v1516_v33 = vmul.f32 %v338_v12, %v55_v41  ;;  %v1521_v35 = vmul.f32 %v342_v13, %v56_v40  ;;  %v2391_v37 = vrot.slane %v1113_v2, %v1119_v5 }
   0xd   :  { %v66_v24 = vld [vmem:[%s2387_s0 + $0x198] sm:$0xff]  ;;  %v67_v19 = vld [vmem:[%s2387_s0 + $0x1a0] sm:$0xff]  ;;  %v68_v18 = vld [vmem:[%s2387_s0 + $0x1a8] sm:$0xff]  ;;  %v2393_v48 = vrot.slane %v1113_v2, %v1121_v6  ;;  %v2396_v50 = vrot.slane %v1113_v2, %v1130_v9 }
   0xe   :  { %v69_v17 = vld [vmem:[%s2387_s0 + $0x1b0] sm:$0xff]  ;;  %v70_v22 = vld [vmem:[%s2387_s0 + $0x1b8] sm:$0xff]  ;;  %v71_v23 = vld [vmem:[%s2387_s0 + $0x1c0] sm:$0xff]  ;;  %2390 = vst [vmem:[#allocation3_spill] sm:$0xff] %v1521_v35  ;;  %v1526_v47 = vmul.f32 %v2391_v37, %v57_v39 }
   0xf   :  { %v72_v15 = vld [vmem:[%s2387_s0 + $0x1c8] sm:$0xff]  ;;  %v73_v14 = vld [vmem:[%s2387_s0 + $0x1d0] sm:$0xff]  ;;  %v74_v45 = vld [vmem:[%s2387_s0 + $0x1d8] sm:$0xff]  ;;  %v1531_v49 = vmul.f32 %v2393_v48, %v58_v38  ;;  %v2395_v38 = vrot.slane %v1113_v2, %v1128_v8  ;;  %v1553_v37 = vmul.f32 %v2396_v50, %v60_v31  ;;  %v2398_v48 = vrot.slane %v1113_v2, %v1132_v10 }
  0x10   :  { %v75_v57 = vld [vmem:[%s2387_s0 + $0x1e0] sm:$0xff]  ;;  %v76_v58 = vld [vmem:[%s2387_s0 + $0x1e8] sm:$0xff]  ;;  %v77_v0 = vld [vmem:[%s2387_s0 + $0x1f0] sm:$0xff]  ;;  %2392 = vst [vmem:[#allocation4_spill] sm:$0xff] %v1526_v47  ;;  %v2400_v47 = vrot.slane %v1113_v2, %v1134_v11  ;;  %v2402_v2 = vrot.slane %v1126_v7, %v1115_v3 }
  0x11   :  { %v78_v36 = vld [vmem:[%s2387_s0 + $0x1f8] sm:$0xff]  ;;  %2394 = vst [vmem:[#allocation5_spill] sm:$0xff] %v1531_v49  ;;  %v79_v12 = vld [vmem:[%s2387_s0 + $0x200] sm:$0xff]  ;;  %v80_v41 = vld [vmem:[%s2387_s0 + $0x208] sm:$0xff]  ;;  %v1548_v40 = vmul.f32 %v2395_v38, %v59_v32  ;;  %v1558_v49 = vmul.f32 %v2398_v48, %v61_v30  ;;  %v2406_v48 = vrot.slane %v1126_v7, %v1119_v5 }
  0x12   :  { %v81_v13 = vld [vmem:[%s2387_s0 + $0x210] sm:$0xff]  ;;  %v82_v39 = vld [vmem:[%s2387_s0 + $0x218] sm:$0xff]  ;;  %2397 = vst [vmem:[#allocation6_spill] sm:$0xff] %v1553_v37  ;;  %v1563_v35 = vmul.f32 %v2400_v47, %v62_v29  ;;  %v83_v32 = vld [vmem:[%s2387_s0 + $0x220] sm:$0xff]  ;;  %v1580_v29 = vmul.f32 %v2402_v2, %v63_v28  ;;  %v2404_v47 = vrot.slane %v1126_v7, %v1117_v4 }
  0x13   :  { %2399 = vst [vmem:[#allocation7_spill] sm:$0xff] %v1558_v49  ;;  %v84_v38 = vld [vmem:[%s2387_s0 + $0x228] sm:$0xff]  ;;  %v85_v31 = vld [vmem:[%s2387_s0 + $0x230] sm:$0xff]  ;;  %v86_v30 = vld [vmem:[%s2387_s0 + $0x238] sm:$0xff]  ;;  %v2408_v49 = vrot.slane %v1126_v7, %v1121_v6 }
  0x14   :  { %2401 = vst [vmem:[#allocation8_spill] sm:$0xff] %v1563_v35  ;;  %2403 = vst [vmem:[#allocation9_spill] sm:$0xff] %v1580_v29  ;;  %v1585_v50 = vmul.f32 %v2404_v47, %v64_v27  ;;  %v1590_v35 = vmul.f32 %v2406_v48, %v65_v26  ;;  %v87_v28 = vld [vmem:[%s2387_s0 + $0x240] sm:$0xff]  ;;  %v88_v2 = vld [vmem:[%s2387_s0 + $0x248] sm:$0xff]  ;;  %v2411_v47 = vrot.slane %v1126_v7, %v1130_v9 }
  0x15   :  { %v1595_v37 = vmul.f32 %v2408_v49, %v66_v24  ;;  %v89_v27 = vld [vmem:[%s2387_s0 + $0x250] sm:$0xff]  ;;  %v90_v26 = vld [vmem:[%s2387_s0 + $0x258] sm:$0xff]  ;;  %v2410_v24 = vrot.slane %v1126_v7, %v1128_v8 }
  0x16   :  { %2405 = vst [vmem:[#allocation10_spill] sm:$0xff] %v1585_v50  ;;  %2407 = vst [vmem:[#allocation11_spill] sm:$0xff] %v1590_v35  ;;  %v1617_v48 = vmul.f32 %v2411_v47, %v68_v18  ;;  %v2415_v50 = vrot.slane %v1126_v7, %v1134_v11  ;;  %v93_v18 = vld [vmem:[%s2387_s0 + $0x270] sm:$0xff]  ;;  %v2421_v47 = vrot.slane %v1147_v16, %v1119_v5 }
  0x17   :  { %2409 = vst [vmem:[#allocation12_spill] sm:$0xff] %v1595_v37  ;;  %v1612_v49 = vmul.f32 %v2410_v24, %v67_v19  ;;  %v2413_v37 = vrot.slane %v1126_v7, %v1132_v10  ;;  %v91_v19 = vld [vmem:[%s2387_s0 + $0x260] sm:$0xff]  ;;  %v92_v24 = vld [vmem:[%s2387_s0 + $0x268] sm:$0xff]  ;;  %v2417_v7 = vrot.slane %v1147_v16, %v1115_v3 }
  0x18   :  { %2412 = vst [vmem:[#allocation13_spill] sm:$0xff] %v1617_v48  ;;  %v1627_v29 = vmul.f32 %v2415_v50, %v70_v22 }
  0x19   :  { %v1622_v35 = vmul.f32 %v2413_v37, %v69_v17  ;;  %v94_v17 = vld [vmem:[%s2387_s0 + $0x278] sm:$0xff]  ;;  %v1644_v22 = vmul.f32 %v2417_v7, %v71_v23  ;;  %v2419_v37 = vrot.slane %v1147_v16, %v1117_v4  ;;  %v95_v23 = vld [vmem:[%s2387_s0 + $0x280] sm:$0xff]  ;;  %v96_v7 = vld [vmem:[%s2387_s0 + $0x288] sm:$0xff] }
  0x1a   :  { %2416 = vst [vmem:[#allocation15_spill] sm:$0xff] %v1627_v29  ;;  %v1654_v29 = vmul.f32 %v2421_v47, %v73_v14  ;;  %v98_v14 = vld [vmem:[%s2387_s0 + $0x298] sm:$0xff] }
  0x1b   :  { %2414 = vst [vmem:[#allocation14_spill] sm:$0xff] %v1622_v35  ;;  %2418 = vst [vmem:[#allocation16_spill] sm:$0xff] %v1644_v22  ;;  %v1649_v50 = vmul.f32 %v2419_v37, %v72_v15  ;;  %v2423_v35 = vrot.slane %v1147_v16, %v1121_v6  ;;  %v97_v15 = vld [vmem:[%s2387_s0 + $0x290] sm:$0xff]  ;;  %v2426_v37 = vrot.slane %v1147_v16, %v1130_v9 }
  0x1c   :  { %2422 = vst [vmem:[#allocation18_spill] sm:$0xff] %v1654_v29 }
  0x1d   :  { %2420 = vst [vmem:[#allocation17_spill] sm:$0xff] %v1649_v50  ;;  %v1659_v48 = vmul.f32 %v2423_v35, %v74_v45  ;;  %v2425_v45 = vrot.slane %v1147_v16, %v1128_v8  ;;  %v1681_v47 = vmul.f32 %v2426_v37, %v76_v58  ;;  %v2430_v50 = vrot.slane %v1147_v16, %v1134_v11  ;;  %v101_v58 = vld [vmem:[%s2387_s0 + $0x2b0] sm:$0xff] }
  0x1e   :  { %v2436_v37 = vrot.slane %v1168_v25, %v1119_v5 }
  0x1f   :  { %2424 = vst [vmem:[#allocation19_spill] sm:$0xff] %v1659_v48  ;;  %v1676_v35 = vmul.f32 %v2425_v45, %v75_v57  ;;  %2427 = vst [vmem:[#allocation20_spill] sm:$0xff] %v1681_v47  ;;  %v2428_v48 = vrot.slane %v1147_v16, %v1132_v10  ;;  %v1691_v22 = vmul.f32 %v2430_v50, %v78_v36  ;;  %v99_v57 = vld [vmem:[%s2387_s0 + $0x2a0] sm:$0xff]  ;;  %v100_v45 = vld [vmem:[%s2387_s0 + $0x2a8] sm:$0xff] }
  0x20   :  { %v2432_v16 = vrot.slane %v1168_v25, %v1115_v3 }
  0x21   :  { %v1686_v29 = vmul.f32 %v2428_v48, %v77_v0  ;;  %2431 = vst [vmem:[#allocation22_spill] sm:$0xff] %v1691_v22  ;;  %v102_v0 = vld [vmem:[%s2387_s0 + $0x2b8] sm:$0xff]  ;;  %v2434_v48 = vrot.slane %v1168_v25, %v1117_v4  ;;  %v1718_v22 = vmul.f32 %v2436_v37, %v81_v13 }
  0x22   :  { %v1708_v36 = vmul.f32 %v2432_v16, %v79_v12  ;;  %v103_v12 = vld [vmem:[%s2387_s0 + $0x2c0] sm:$0xff]  ;;  %v104_v16 = vld [vmem:[%s2387_s0 + $0x2c8] sm:$0xff]  ;;  %v106_v13 = vld [vmem:[%s2387_s0 + $0x2d8] sm:$0xff] }
  0x23   :  { %2429 = vst [vmem:[#allocation21_spill] sm:$0xff] %v1686_v29  ;;  %v1713_v50 = vmul.f32 %v2434_v48, %v80_v41  ;;  %2437 = vst [vmem:[#allocation25_spill] sm:$0xff] %v1718_v22  ;;  %v2438_v29 = vrot.slane %v1168_v25, %v1121_v6  ;;  %v105_v41 = vld [vmem:[%s2387_s0 + $0x2d0] sm:$0xff]  ;;  %v2441_v48 = vrot.slane %v1168_v25, %v1130_v9 }
  0x24   :  { %2433 = vst [vmem:[#allocation23_spill] sm:$0xff] %v1708_v36 }
  0x25   :  { %2435 = vst [vmem:[#allocation24_spill] sm:$0xff] %v1713_v50  ;;  %v1723_v47 = vmul.f32 %v2438_v29, %v82_v39  ;;  %v2440_v39 = vrot.slane %v1168_v25, %v1128_v8  ;;  %v1745_v37 = vmul.f32 %v2441_v48, %v84_v38  ;;  %v2445_v50 = vrot.slane %v1168_v25, %v1134_v11  ;;  %v109_v38 = vld [vmem:[%s2387_s0 + $0x2f0] sm:$0xff] }
  0x26   :  { %v2451_v48 = vrot.slane %v1189_v34, %v1119_v5 }
  0x27   :  { %2439 = vst [vmem:[#allocation26_spill] sm:$0xff] %v1723_v47  ;;  %v1740_v29 = vmul.f32 %v2440_v39, %v83_v32  ;;  %2442 = vst [vmem:[#allocation27_spill] sm:$0xff] %v1745_v37  ;;  %v2443_v47 = vrot.slane %v1168_v25, %v1132_v10  ;;  %v1755_v36 = vmul.f32 %v2445_v50, %v86_v30  ;;  %v107_v32 = vld [vmem:[%s2387_s0 + $0x2e0] sm:$0xff]  ;;  %v108_v39 = vld [vmem:[%s2387_s0 + $0x2e8] sm:$0xff] }
  0x28   :  { %v2447_v25 = vrot.slane %v1189_v34, %v1115_v3 }
  0x29   :  { %v1750_v22 = vmul.f32 %v2443_v47, %v85_v31  ;;  %2446 = vst [vmem:[#allocation29_spill] sm:$0xff] %v1755_v36  ;;  %v110_v31 = vld [vmem:[%s2387_s0 + $0x2f8] sm:$0xff]  ;;  %v2449_v47 = vrot.slane %v1189_v34, %v1117_v4  ;;  %v1782_v36 = vmul.f32 %v2451_v48, %v89_v27 }
  0x2a   :  { %v1772_v30 = vmul.f32 %v2447_v25, %v87_v28  ;;  %v111_v28 = vld [vmem:[%s2387_s0 + $0x300] sm:$0xff]  ;;  %v112_v25 = vld [vmem:[%s2387_s0 + $0x308] sm:$0xff]  ;;  %v114_v27 = vld [vmem:[%s2387_s0 + $0x318] sm:$0xff] }
  0x2b   :  { %2444 = vst [vmem:[#allocation28_spill] sm:$0xff] %v1750_v22  ;;  %v1777_v50 = vmul.f32 %v2449_v47, %v88_v2  ;;  %2452 = vst [vmem:[#allocation32_spill] sm:$0xff] %v1782_v36  ;;  %v2453_v22 = vrot.slane %v1189_v34, %v1121_v6  ;;  %v113_v2 = vld [vmem:[%s2387_s0 + $0x310] sm:$0xff]  ;;  %v2456_v47 = vrot.slane %v1189_v34, %v1130_v9 }
  0x2c   :  { %2448 = vst [vmem:[#allocation30_spill] sm:$0xff] %v1772_v30 }
  0x2d   :  { %2450 = vst [vmem:[#allocation31_spill] sm:$0xff] %v1777_v50  ;;  %v1787_v37 = vmul.f32 %v2453_v22, %v90_v26  ;;  %v2455_v26 = vrot.slane %v1189_v34, %v1128_v8  ;;  %v1809_v48 = vmul.f32 %v2456_v47, %v92_v24  ;;  %v2460_v50 = vrot.slane %v1189_v34, %v1134_v11  ;;  %v117_v24 = vld [vmem:[%s2387_s0 + $0x330] sm:$0xff] }
  0x2e   :  { %v2465_v47 = vrot.slane %v1210_v43, %v1119_v5 }
  0x2f   :  { %2454 = vst [vmem:[#allocation33_spill] sm:$0xff] %v1787_v37  ;;  %v1804_v22 = vmul.f32 %v2455_v26, %v91_v19  ;;  %2457 = vst [vmem:[#allocation34_spill] sm:$0xff] %v1809_v48  ;;  %v2458_v37 = vrot.slane %v1189_v34, %v1132_v10  ;;  %v1819_v30 = vmul.f32 %v2460_v50, %v94_v17  ;;  %v115_v19 = vld [vmem:[%s2387_s0 + $0x320] sm:$0xff]  ;;  %v116_v26 = vld [vmem:[%s2387_s0 + $0x328] sm:$0xff] }
  0x30   :  { %v2462_v34 = vrot.slane %v1210_v43, %v1115_v3 }
  0x31   :  { %v1814_v36 = vmul.f32 %v2458_v37, %v93_v18  ;;  %2461 = vst [vmem:[#allocation36_spill] sm:$0xff] %v1819_v30  ;;  %v118_v18 = vld [vmem:[%s2387_s0 + $0x338] sm:$0xff]  ;;  %v2463_v37 = vrot.slane %v1210_v43, %v1117_v4  ;;  %v1846_v30 = vmul.f32 %v2465_v47, %v97_v15  ;;  %v2469_v15 = vrot.slane %v1210_v43, %v1128_v8 }
  0x32   :  { %v1836_v17 = vmul.f32 %v2462_v34, %v95_v23  ;;  %v119_v23 = vld [vmem:[%s2387_s0 + $0x340] sm:$0xff]  ;;  %v120_v34 = vld [vmem:[%s2387_s0 + $0x348] sm:$0xff]  ;;  %v2471_v47 = vrot.slane %v1210_v43, %v1132_v10 }
  0x33   :  { %2459 = vst [vmem:[#allocation35_spill] sm:$0xff] %v1814_v36  ;;  %v1841_v50 = vmul.f32 %v2463_v37, %v96_v7  ;;  %2466 = vst [vmem:[#allocation38_spill] sm:$0xff] %v1846_v30  ;;  %v2467_v36 = vrot.slane %v1210_v43, %v1121_v6  ;;  %v121_v7 = vld [vmem:[%s2387_s0 + $0x350] sm:$0xff]  ;;  %v1865_v37 = vmul.f32 %v2469_v15, %v99_v57  ;;  %v122_v57 = vld [vmem:[%s2387_s0 + $0x358] sm:$0xff] }
  0x34   :  { %v2473_v30 = vrot.slane %v1210_v43, %v1134_v11  ;;  %v123_v15 = vld [vmem:[%s2387_s0 + $0x360] sm:$0xff] }
  0x35   :  { %2464 = vst [vmem:[#allocation37_spill] sm:$0xff] %v1841_v50  ;;  %v1851_v48 = vmul.f32 %v2467_v36, %v98_v14  ;;  %v2470_v14 = vrot.slane %v1210_v43, %v1130_v9  ;;  %v2476_v43 = vrot.slane %v1231_v52, %v1117_v4 }
  0x36   :  { %v1880_v50 = vmul.f32 %v2473_v30, %v102_v0  ;;  %v2478_v30 = vrot.slane %v1231_v52, %v1119_v5 }
  0x37   :  { %2468 = vst [vmem:[#allocation39_spill] sm:$0xff] %v1851_v48  ;;  %v1870_v36 = vmul.f32 %v2470_v14, %v100_v45  ;;  %v1875_v48 = vmul.f32 %v2471_v47, %v101_v58  ;;  %v124_v45 = vld [vmem:[%s2387_s0 + $0x368] sm:$0xff]  ;;  %v2475_v58 = vrot.slane %v1231_v52, %v1115_v3  ;;  %v1899_v0 = vmul.f32 %v2476_v43, %v104_v16  ;;  %v127_v16 = vld [vmem:[%s2387_s0 + $0x380] sm:$0xff] }
  0x38   :  { %2474 = vst [vmem:[#allocation41_spill] sm:$0xff] %v1880_v50  ;;  %v1904_v47 = vmul.f32 %v2478_v30, %v105_v41  ;;  %v2480_v50 = vrot.slane %v1231_v52, %v1121_v6  ;;  %v2482_v41 = vrot.slane %v1231_v52, %v1128_v8  ;;  %v2484_v30 = vrot.slane %v1231_v52, %v1132_v10 }
  0x39   :  { %2472 = vst [vmem:[#allocation40_spill] sm:$0xff] %v1875_v48  ;;  %v1894_v14 = vmul.f32 %v2475_v58, %v103_v12  ;;  %2477 = vst [vmem:[#allocation42_spill] sm:$0xff] %v1899_v0  ;;  %v125_v12 = vld [vmem:[%s2387_s0 + $0x370] sm:$0xff]  ;;  %v126_v58 = vld [vmem:[%s2387_s0 + $0x378] sm:$0xff] }
  0x3a   :  { %2479 = vst [vmem:[#allocation43_spill] sm:$0xff] %v1904_v47  ;;  %v1909_v48 = vmul.f32 %v2480_v50, %v106_v13  ;;  %v1923_v43 = vmul.f32 %v2482_v41, %v107_v32  ;;  %v2483_v13 = vrot.slane %v1231_v52, %v1130_v9  ;;  %v2486_v47 = vrot.slane %v1231_v52, %v1134_v11  ;;  %v128_v32 = vld [vmem:[%s2387_s0 + $0x388] sm:$0xff]  ;;  %v129_v41 = vld [vmem:[%s2387_s0 + $0x390] sm:$0xff] }
  0x3b   :  { %v2489_v52 = vrot.slane %v1252_v61, %v1117_v4 }
  0x3c   :  { %2481 = vst [vmem:[#allocation44_spill] sm:$0xff] %v1909_v48  ;;  %v1928_v50 = vmul.f32 %v2483_v13, %v108_v39  ;;  %v1933_v48 = vmul.f32 %v2484_v30, %v109_v38  ;;  %v1938_v0 = vmul.f32 %v2486_v47, %v110_v31  ;;  %v130_v39 = vld [vmem:[%s2387_s0 + $0x398] sm:$0xff]  ;;  %v2488_v38 = vrot.slane %v1252_v61, %v1115_v3 }
  0x3d   :  { %v1957_v31 = vmul.f32 %v2489_v52, %v112_v25  ;;  %v2491_v47 = vrot.slane %v1252_v61, %v1119_v5  ;;  %v133_v25 = vld [vmem:[%s2387_s0 + $0x3b0] sm:$0xff] }
  0x3e   :  { %2485 = vst [vmem:[#allocation45_spill] sm:$0xff] %v1933_v48  ;;  %2487 = vst [vmem:[#allocation46_spill] sm:$0xff] %v1938_v0  ;;  %v1952_v13 = vmul.f32 %v2488_v38, %v111_v28  ;;  %v2493_v0 = vrot.slane %v1252_v61, %v1121_v6  ;;  %v131_v28 = vld [vmem:[%s2387_s0 + $0x3a0] sm:$0xff]  ;;  %v132_v38 = vld [vmem:[%s2387_s0 + $0x3a8] sm:$0xff] }
  0x3f   :  { %2490 = vst [vmem:[#allocation47_spill] sm:$0xff] %v1957_v31  ;;  %v1962_v30 = vmul.f32 %v2491_v47, %v113_v2  ;;  %v2495_v2 = vrot.slane %v1252_v61, %v1128_v8  ;;  %v2497_v47 = vrot.slane %v1252_v61, %v1132_v10 }
  0x40   :  { %v1967_v48 = vmul.f32 %v2493_v0, %v114_v27  ;;  %v2496_v27 = vrot.slane %v1252_v61, %v1130_v9 }
  0x41   :  { %2492 = vst [vmem:[#allocation48_spill] sm:$0xff] %v1962_v30  ;;  %v1981_v52 = vmul.f32 %v2495_v2, %v115_v19  ;;  %v2499_v30 = vrot.slane %v1252_v61, %v1134_v11  ;;  %v134_v19 = vld [vmem:[%s2387_s0 + $0x3b8] sm:$0xff]  ;;  %v135_v2 = vld [vmem:[%s2387_s0 + $0x3c0] sm:$0xff]  ;;  %v2502_v61 = vrot.slane %v1273_v63, %v1117_v4 }
  0x42   :  { %2494 = vst [vmem:[#allocation49_spill] sm:$0xff] %v1967_v48  ;;  %v1986_v0 = vmul.f32 %v2496_v27, %v116_v26  ;;  %v1991_v48 = vmul.f32 %v2497_v47, %v117_v24  ;;  %v136_v26 = vld [vmem:[%s2387_s0 + $0x3c8] sm:$0xff]  ;;  %v2501_v24 = vrot.slane %v1273_v63, %v1115_v3 }
  0x43   :  { %v1996_v31 = vmul.f32 %v2499_v30, %v118_v18  ;;  %v2015_v18 = vmul.f32 %v2502_v61, %v120_v34  ;;  %v2504_v30 = vrot.slane %v1273_v63, %v1119_v5  ;;  %v139_v34 = vld [vmem:[%s2387_s0 + $0x3e0] sm:$0xff] }
  0x44   :  { %2498 = vst [vmem:[#allocation50_spill] sm:$0xff] %v1991_v48  ;;  %v2010_v27 = vmul.f32 %v2501_v24, %v119_v23  ;;  %v137_v23 = vld [vmem:[%s2387_s0 + $0x3d0] sm:$0xff]  ;;  %v138_v24 = vld [vmem:[%s2387_s0 + $0x3d8] sm:$0xff] }
  0x45   :  { %2500 = vst [vmem:[#allocation51_spill] sm:$0xff] %v1996_v31  ;;  %2503 = vst [vmem:[#allocation52_spill] sm:$0xff] %v2015_v18  ;;  %v2020_v47 = vmul.f32 %v2504_v30, %v121_v7  ;;  %v2506_v31 = vrot.slane %v1273_v63, %v1121_v6  ;;  %v2508_v7 = vrot.slane %v1273_v63, %v1128_v8 }
  0x46   :  { %v2510_v30 = vrot.slane %v1273_v63, %v1132_v10 }
  0x47   :  { %2505 = vst [vmem:[#allocation53_spill] sm:$0xff] %v2020_v47  ;;  %v2025_v48 = vmul.f32 %v2506_v31, %v122_v57  ;;  %v2039_v61 = vmul.f32 %v2508_v7, %v123_v15  ;;  %v2509_v57 = vrot.slane %v1273_v63, %v1130_v9  ;;  %v2512_v47 = vrot.slane %v1273_v63, %v1134_v11  ;;  %v140_v15 = vld [vmem:[%s2387_s0 + $0x3e8] sm:$0xff]  ;;  %v141_v7 = vld [vmem:[%s2387_s0 + $0x3f0] sm:$0xff] }
  0x48   :  { %v2516_v63 = vrot.slane %v1294_v60, %v1117_v4 }
  0x49   :  { %2507 = vst [vmem:[#allocation54_spill] sm:$0xff] %v2025_v48  ;;  %v2044_v31 = vmul.f32 %v2509_v57, %v124_v45  ;;  %v2049_v48 = vmul.f32 %v2510_v30, %v125_v12  ;;  %v2054_v18 = vmul.f32 %v2512_v47, %v126_v58  ;;  %v142_v45 = vld [vmem:[%s2387_s0 + $0x3f8] sm:$0xff]  ;;  %v2514_v12 = vrot.slane %v1294_v60, %v1115_v3 }
  0x4a   :  { %v2073_v58 = vmul.f32 %v2516_v63, %v128_v32  ;;  %v2517_v47 = vrot.slane %v1294_v60, %v1119_v5  ;;  %v2521_v32 = vrot.slane %v1294_v60, %v1130_v9 }
  0x4b   :  { %2511 = vst [vmem:[#allocation55_spill] sm:$0xff] %v2049_v48  ;;  %2513 = vst [vmem:[#allocation56_spill] sm:$0xff] %v2054_v18  ;;  %v2068_v57 = vmul.f32 %v2514_v12, %v127_v16  ;;  %v2518_v18 = vrot.slane %v1294_v60, %v1121_v6  ;;  %v18_v16 = vld [vmem:[%s2387_s0 + $0x18] sm:$0xff]  ;;  %v2520_v12 = vrot.slane %v1294_v60, %v1128_v8 }
  0x4c   :  { %v2078_v30 = vmul.f32 %v2517_v47, %v129_v41  ;;  %v2096_v63 = vmul.f32 %v2521_v32, %v132_v38  ;;  %v2522_v41 = vrot.slane %v1294_v60, %v1132_v10  ;;  %v2526_v32 = vrot.slane %v1315_v62, %v1119_v5 }
  0x4d   :  { %2515 = vst [vmem:[#allocation57_spill] sm:$0xff] %v2068_v57  ;;  %v2083_v48 = vmul.f32 %v2518_v18, %v130_v39  ;;  %v2091_v57 = vmul.f32 %v2520_v12, %v131_v28  ;;  %v2523_v39 = vrot.slane %v1294_v60, %v1134_v11  ;;  %v2525_v12 = vrot.slane %v1315_v62, %v1117_v4 }
  0x4e   :  { %v2101_v47 = vmul.f32 %v2522_v41, %v133_v25  ;;  %v2121_v25 = vmul.f32 %v2526_v32, %v137_v23  ;;  %v2527_v60 = vrot.slane %v1315_v62, %v1121_v6  ;;  %v2532_v23 = vrot.slane %v1315_v62, %v1132_v10 }
  0x4f   :  { %2519 = vst [vmem:[#allocation58_spill] sm:$0xff] %v2083_v48  ;;  %v2106_v18 = vmul.f32 %v2523_v39, %v134_v19  ;;  %v2524_v48 = vrot.slane %v1315_v62, %v1115_v3  ;;  %v2116_v38 = vmul.f32 %v2525_v12, %v136_v26  ;;  %v2530_v26 = vrot.slane %v1315_v62, %v1130_v9 }
  0x50   :  { %v2126_v19 = vmul.f32 %v2527_v60, %v138_v24  ;;  %v2144_v12 = vmul.f32 %v2532_v23, %v141_v7  ;;  %v2534_v24 = vrot.slane %v1315_v62, %v1134_v11  ;;  %v198_v60 = vrot.slane %v1360_v55, %v1130_v9  ;;  %v20_v7 = vld [vmem:[%s2387_s0 + $0x28] sm:$0xff] }
  0x51   :  { %v2111_v28 = vmul.f32 %v2524_v48, %v135_v2  ;;  %v19_v48 = vld [vmem:[%s2387_s0 + $0x20] sm:$0xff]  ;;  %v2528_v2 = vrot.slane %v1315_v62, %v1128_v8  ;;  %v2139_v39 = vmul.f32 %v2530_v26, %v140_v15  ;;  %v943_v15 = vadd.f32 %v1459_v20, %v1457_v21  ;;  %v144_v20 = vld [vmem:[%s2386_s1 + $0x8] sm:$0xff] }
  0x52   :  { %2533 = vst [vmem:[#allocation61_spill] sm:$0xff] %v2144_v12  ;;  %v2149_v32 = vmul.f32 %v2534_v24, %v142_v45  ;;  %v202_v26 = vrot.slane %v1360_v55, %v1132_v10  ;;  %v2537_v62 = vrot.slane %v1360_v55, %v1128_v8  ;;  %v206_v21 = vrot.slane %v1360_v55, %v1134_v11 }
  0x53   :  { %v2134_v41 = vmul.f32 %v2528_v2, %v139_v34  ;;  %2531 = vst [vmem:[#allocation60_spill] sm:$0xff] %v2139_v39  ;;  %v2536_v34 = vrot.slane %v1360_v55, %v1121_v6  ;;  %v944_v23 = vadd.f32 %v943_v15, %v1473_v53  ;;  %v820_v24 = vmul.f32 %v198_v60, %v20_v7  ;;  %v24_v55 = vld [vmem:[%s2387_s0 + $0x48] sm:$0xff] }
  0x54   :  { %2535 = vst [vmem:[#allocation62_spill] sm:$0xff] %v2149_v32  ;;  %v819_v45 = vmul.f32 %v2537_v62, %v19_v48  ;;  %v22_v32 = vld [vmem:[%s2387_s0 + $0x38] sm:$0xff]  ;;  %v210_v48 = vrot.slane %v144_v20, %v1115_v3  ;;  %v23_v62 = vld [vmem:[%s2387_s0 + $0x40] sm:$0xff]  ;;  %v214_v12 = vrot.slane %v144_v20, %v1117_v4  ;;  %v218_v60 = vrot.slane %v144_v20, %v1119_v5 }
  0x55   :  { %2529 = vst [vmem:[#allocation59_spill] sm:$0xff] %v2134_v41  ;;  %v818_v2 = vmul.f32 %v2536_v34, %v18_v16  ;;  %v21_v16 = vld [vmem:[%s2387_s0 + $0x30] sm:$0xff]  ;;  %v822_v39 = vmul.f32 %v206_v21, %v22_v32  ;;  %v26_v32 = vld [vmem:[%s2387_s0 + $0x58] sm:$0xff]  ;;  %v226_v21 = vrot.slane %v144_v20, %v1128_v8 }
  0x56   :  { %v821_v53 = vmul.f32 %v202_v26, %v21_v16  ;;  %v25_v26 = vld [vmem:[%s2387_s0 + $0x50] sm:$0xff] }
  0x57   :  { %v945_v34 = vadd.f32 %v944_v23, %v818_v2  ;;  %v823_v2 = vmul.f32 %v210_v48, %v23_v62  ;;  %v824_v23 = vmul.f32 %v214_v12, %v24_v55  ;;  %v230_v48 = vrot.slane %v144_v20, %v1130_v9 }
  0x58   :  { %v234_v12 = vrot.slane %v144_v20, %v1132_v10 }
  0x59   :  { %v946_v15 = vadd.f32 %v945_v34, %v819_v45  ;;  %v222_v45 = vrot.slane %v144_v20, %v1121_v6 }
  0x5b   :  { %v947_v41 = vadd.f32 %v946_v15, %v820_v24  ;;  %v825_v24 = vmul.f32 %v218_v60, %v25_v26  ;;  %v29_v60 = vld [vmem:[%s2387_s0 + $0x70] sm:$0xff] }
  0x5d   :  { %v948_v7 = vadd.f32 %v947_v41, %v821_v53  ;;  %v27_v41 = vld [vmem:[%s2387_s0 + $0x60] sm:$0xff]  ;;  %v826_v53 = vmul.f32 %v222_v45, %v26_v32  ;;  %v829_v32 = vmul.f32 %v234_v12, %v29_v60  ;;  %v33_v12 = vld [vmem:[%s2387_s0 + $0x90] sm:$0xff] }
  0x5e   :  { %v827_v62 = vmul.f32 %v226_v21, %v27_v41 }
  0x5f   :  { %v949_v16 = vadd.f32 %v948_v7, %v822_v39  ;;  %v28_v39 = vld [vmem:[%s2387_s0 + $0x68] sm:$0xff]  ;;  %v238_v7 = vrot.slane %v144_v20, %v1134_v11 }
  0x60   :  { %v828_v26 = vmul.f32 %v230_v48, %v28_v39  ;;  %v32_v20 = vld [vmem:[%s2387_s0 + $0x88] sm:$0xff] }
  0x61   :  { %v950_v34 = vadd.f32 %v949_v16, %v823_v2  ;;  %v145_v2 = vld [vmem:[%s2386_s1 + $0x10] sm:$0xff] }
  0x62   :  { %v242_v16 = vrot.slane %v145_v2, %v1115_v3  ;;  %v250_v48 = vrot.slane %v145_v2, %v1119_v5 }
  0x63   :  { %v951_v15 = vadd.f32 %v950_v34, %v824_v23  ;;  %v30_v23 = vld [vmem:[%s2387_s0 + $0x78] sm:$0xff]  ;;  %v246_v34 = vrot.slane %v145_v2, %v1117_v4 }
  0x64   :  { %v830_v41 = vmul.f32 %v238_v7, %v30_v23  ;;  %v34_v7 = vld [vmem:[%s2387_s0 + $0x98] sm:$0xff] }
  0x65   :  { %v952_v55 = vadd.f32 %v951_v15, %v825_v24  ;;  %v31_v24 = vld [vmem:[%s2387_s0 + $0x80] sm:$0xff] }
  0x67   :  { %v953_v45 = vadd.f32 %v952_v55, %v826_v53  ;;  %v831_v53 = vmul.f32 %v242_v16, %v31_v24  ;;  %v832_v55 = vmul.f32 %v246_v34, %v32_v20  ;;  %v35_v16 = vld [vmem:[%s2387_s0 + $0xa0] sm:$0xff]  ;;  %v36_v34 = vld [vmem:[%s2387_s0 + $0xa8] sm:$0xff] }
  0x69   :  { %v954_v21 = vadd.f32 %v953_v45, %v827_v62  ;;  %v254_v62 = vrot.slane %v145_v2, %v1121_v6  ;;  %v833_v45 = vmul.f32 %v250_v48, %v33_v12  ;;  %v37_v48 = vld [vmem:[%s2387_s0 + $0xb0] sm:$0xff] }
  0x6b   :  { %v955_v15 = vadd.f32 %v954_v21, %v828_v26  ;;  %v258_v26 = vrot.slane %v145_v2, %v1128_v8  ;;  %v834_v21 = vmul.f32 %v254_v62, %v34_v7 }
  0x6d   :  { %v956_v39 = vadd.f32 %v955_v15, %v829_v32  ;;  %v262_v32 = vrot.slane %v145_v2, %v1130_v9  ;;  %v835_v15 = vmul.f32 %v258_v26, %v35_v16 }
  0x6f   :  { %v957_v60 = vadd.f32 %v956_v39, %v830_v41  ;;  %v266_v41 = vrot.slane %v145_v2, %v1132_v10  ;;  %v270_v39 = vrot.slane %v145_v2, %v1134_v11  ;;  %v836_v12 = vmul.f32 %v262_v32, %v36_v34  ;;  %v40_v2 = vld [vmem:[%s2387_s0 + $0xc8] sm:$0xff] }
  0x71   :  { %v958_v23 = vadd.f32 %v957_v60, %v831_v53  ;;  %v146_v53 = vld [vmem:[%s2386_s1 + $0x18] sm:$0xff]  ;;  %v837_v7 = vmul.f32 %v266_v41, %v37_v48  ;;  %v41_v41 = vld [vmem:[%s2387_s0 + $0xd0] sm:$0xff] }
  0x72   :  { %v274_v60 = vrot.slane %v146_v53, %v1115_v3  ;;  %v282_v32 = vrot.slane %v146_v53, %v1119_v5  ;;  %v43_v5 = vld [vmem:[%s2387_s0 + $0xe0] sm:$0xff] }
  0x73   :  { %v959_v24 = vadd.f32 %v958_v23, %v832_v55  ;;  %v38_v55 = vld [vmem:[%s2387_s0 + $0xb8] sm:$0xff]  ;;  %v278_v23 = vrot.slane %v146_v53, %v1117_v4 }
  0x74   :  { %v838_v16 = vmul.f32 %v270_v39, %v38_v55  ;;  %v42_v4 = vld [vmem:[%s2387_s0 + $0xd8] sm:$0xff]  ;;  %v290_v39 = vrot.slane %v146_v53, %v1128_v8  ;;  %v294_v55 = vrot.slane %v146_v53, %v1130_v9  ;;  %v45_v8 = vld [vmem:[%s2387_s0 + $0xf0] sm:$0xff] }
  0x75   :  { %v960_v20 = vadd.f32 %v959_v24, %v833_v45  ;;  %v39_v45 = vld [vmem:[%s2387_s0 + $0xc0] sm:$0xff]  ;;  %v46_v9 = vld [vmem:[%s2387_s0 + $0xf8] sm:$0xff] }
  0x77   :  { %v961_v62 = vadd.f32 %v960_v20, %v834_v21  ;;  %v839_v21 = vmul.f32 %v274_v60, %v39_v45  ;;  %v840_v20 = vmul.f32 %v278_v23, %v40_v2  ;;  %v843_v45 = vmul.f32 %v290_v39, %v43_v5 }
  0x79   :  { %v962_v26 = vadd.f32 %v961_v62, %v835_v15  ;;  %v286_v15 = vrot.slane %v146_v53, %v1121_v6  ;;  %v44_v6 = vld [vmem:[%s2387_s0 + $0xe8] sm:$0xff] }
  0x7b   :  { %v963_v24 = vadd.f32 %v962_v26, %v836_v12  ;;  %v841_v12 = vmul.f32 %v282_v32, %v41_v41  ;;  %v842_v60 = vmul.f32 %v286_v15, %v42_v4  ;;  %v298_v26 = vrot.slane %v146_v53, %v1132_v10  ;;  %v47_v10 = vld [vmem:[%s2387_s0 + $0x100] sm:$0xff] }
  0x7c   :  { %v306_v32 = vrot.slane %v1383_v54, %v1115_v3 }
  0x7d   :  { %v964_v34 = vadd.f32 %v963_v24, %v837_v7  ;;  %v844_v24 = vmul.f32 %v294_v55, %v44_v6  ;;  %v2539_v6 = vld [vmem:[#allocation4_spill] sm:$0xff] }
  0x7f   :  { %v965_v48 = vadd.f32 %v964_v34, %v838_v16  ;;  %v302_v16 = vrot.slane %v146_v53, %v1134_v11 }
  0x81   :  { %v966_v62 = vadd.f32 %v965_v48, %v839_v21  ;;  %v845_v21 = vmul.f32 %v298_v26, %v45_v8  ;;  %v846_v41 = vmul.f32 %v302_v16, %v46_v9  ;;  %v2542_v8 = vld [vmem:[#allocation7_spill] sm:$0xff]  ;;  %v2543_v16 = vld [vmem:[#allocation8_spill] sm:$0xff] }
  0x82   :  { %v2546_v9 = vld [vmem:[#allocation11_spill] sm:$0xff] }
  0x83   :  { %v967_v7 = vadd.f32 %v966_v62, %v840_v20  ;;  %v847_v20 = vmul.f32 %v306_v32, %v47_v10  ;;  %v2547_v32 = vld [vmem:[#allocation12_spill] sm:$0xff]  ;;  %v2548_v10 = vld [vmem:[#allocation13_spill] sm:$0xff] }
  0x85   :  { %v968_v23 = vadd.f32 %v967_v7, %v841_v12 }
  0x87   :  { %v969_v2 = vadd.f32 %v968_v23, %v842_v60  ;;  %v2538_v60 = vld [vmem:[#allocation3_spill] sm:$0xff]  ;;  %v2541_v23 = vld [vmem:[#allocation6_spill] sm:$0xff] }
  0x89   :  { %v970_v34 = vadd.f32 %v969_v2, %v843_v45  ;;  %v2540_v45 = vld [vmem:[#allocation5_spill] sm:$0xff]  ;;  %v2545_v2 = vld [vmem:[#allocation10_spill] sm:$0xff] }
  0x8b   :  { %v971_v15 = vadd.f32 %v970_v34, %v844_v24  ;;  %v2544_v24 = vld [vmem:[#allocation9_spill] sm:$0xff] }
  0x8d   :  { %v972_v48 = vadd.f32 %v971_v15, %v845_v21  ;;  %v2549_v15 = vld [vmem:[#allocation14_spill] sm:$0xff] }
  0x8f   :  { %v973_v11 = vadd.f32 %v972_v48, %v846_v41 }
  0x91   :  { %v974_v53 = vadd.f32 %v973_v11, %v847_v20  ;;  %v2550_v20 = vld [vmem:[#allocation15_spill] sm:$0xff]  ;;  %v2551_v11 = vld [vmem:[#allocation16_spill] sm:$0xff] }
  0x93   :  { %v975_v4 = vadd.f32 %v974_v53, %v1475_v51 }
  0x95   :  { %v976_v39 = vadd.f32 %v975_v4, %v1477_v59  ;;  %v2552_v4 = vld [vmem:[#allocation17_spill] sm:$0xff] }
  0x97   :  { %v977_v12 = vadd.f32 %v976_v39, %v1479_v1 }
  0x99   :  { %v978_v3 = vadd.f32 %v977_v12, %v1493_v44  ;;  %v2553_v12 = vld [vmem:[#allocation18_spill] sm:$0xff] }
  0x9b   :  { %v979_v54 = vadd.f32 %v978_v3, %v1495_v42 }
  0x9d   :  { %v980_v62 = vadd.f32 %v979_v54, %v1497_v46  ;;  %v2554_v54 = vld [vmem:[#allocation19_spill] sm:$0xff] }
  0x9f   :  { %v981_v5 = vadd.f32 %v980_v62, %v1499_v56 }
  0xa1   :  { %v982_v55 = vadd.f32 %v981_v5, %v1516_v33 }
  0xa3   :  { %v983_v7 = vadd.f32 %v982_v55, %v2538_v60  ;;  %v2555_v55 = vld [vmem:[#allocation20_spill] sm:$0xff] }
  0xa5   :  { %v984_v26 = vadd.f32 %v983_v7, %v2539_v6  ;;  %v2556_v7 = vld [vmem:[#allocation21_spill] sm:$0xff]  ;;  %v2557_v6 = vld [vmem:[#allocation22_spill] sm:$0xff] }
  0xa7   :  { %v985_v51 = vadd.f32 %v984_v26, %v2540_v45  ;;  %v2558_v45 = vld [vmem:[#allocation23_spill] sm:$0xff] }
  0xa9   :  { %v986_v59 = vadd.f32 %v985_v51, %v1548_v40 }
  0xab   :  { %v987_v1 = vadd.f32 %v986_v59, %v2541_v23  ;;  %v2559_v59 = vld [vmem:[#allocation24_spill] sm:$0xff] }
  0xad   :  { %v988_v44 = vadd.f32 %v987_v1, %v2542_v8  ;;  %v2560_v1 = vld [vmem:[#allocation25_spill] sm:$0xff] }
  0xaf   :  { %v989_v42 = vadd.f32 %v988_v44, %v2543_v16  ;;  %v2561_v44 = vld [vmem:[#allocation26_spill] sm:$0xff] }
  0xb1   :  { %v990_v46 = vadd.f32 %v989_v42, %v2544_v24  ;;  %v2562_v24 = vld [vmem:[#allocation27_spill] sm:$0xff] }
  0xb3   :  { %v991_v56 = vadd.f32 %v990_v46, %v2545_v2  ;;  %v2563_v2 = vld [vmem:[#allocation28_spill] sm:$0xff] }
  0xb5   :  { %v992_v33 = vadd.f32 %v991_v56, %v2546_v9  ;;  %v2564_v56 = vld [vmem:[#allocation29_spill] sm:$0xff] }
  0xb7   :  { %v993_v21 = vadd.f32 %v992_v33, %v2547_v32  ;;  %v2565_v33 = vld [vmem:[#allocation30_spill] sm:$0xff] }
  0xb9   :  { %v994_v34 = vadd.f32 %v993_v21, %v1612_v49  ;;  %v2566_v21 = vld [vmem:[#allocation31_spill] sm:$0xff] }
  0xbb   :  { %v995_v41 = vadd.f32 %v994_v34, %v2548_v10  ;;  %v2567_v10 = vld [vmem:[#allocation32_spill] sm:$0xff] }
  0xbd   :  { %v996_v40 = vadd.f32 %v995_v41, %v2549_v15  ;;  %v2568_v15 = vld [vmem:[#allocation33_spill] sm:$0xff] }
  0xbf   :  { %v997_v48 = vadd.f32 %v996_v40, %v2550_v20 }
  0xc1   :  { %v998_v53 = vadd.f32 %v997_v48, %v2551_v11  ;;  %v2569_v48 = vld [vmem:[#allocation34_spill] sm:$0xff] }
  0xc3   :  { %v999_v39 = vadd.f32 %v998_v53, %v2552_v4  ;;  %v2570_v53 = vld [vmem:[#allocation35_spill] sm:$0xff]  ;;  %v2571_v4 = vld [vmem:[#allocation36_spill] sm:$0xff] }
  0xc5   :  { %v1000_v3 = vadd.f32 %v999_v39, %v2553_v12 }
  0xc7   :  { %v1001_v62 = vadd.f32 %v1000_v3, %v2554_v54  ;;  %v2572_v3 = vld [vmem:[#allocation37_spill] sm:$0xff] }
  0xc9   :  { %v1002_v5 = vadd.f32 %v1001_v62, %v1676_v35  ;;  %v2573_v62 = vld [vmem:[#allocation38_spill] sm:$0xff] }
  0xcb   :  { %v1003_v60 = vadd.f32 %v1002_v5, %v2555_v55  ;;  %v2574_v55 = vld [vmem:[#allocation39_spill] sm:$0xff] }
  0xcd   :  { %v1004_v49 = vadd.f32 %v1003_v60, %v2556_v7 }
  0xcf   :  { %v1005_v26 = vadd.f32 %v1004_v49, %v2557_v6  ;;  %v2575_v6 = vld [vmem:[#allocation40_spill] sm:$0xff] }
  0xd1   :  { %v1006_v51 = vadd.f32 %v1005_v26, %v2558_v45  ;;  %v2576_v26 = vld [vmem:[#allocation41_spill] sm:$0xff] }
  0xd3   :  { %v1007_v23 = vadd.f32 %v1006_v51, %v2559_v59  ;;  %v2577_v59 = vld [vmem:[#allocation42_spill] sm:$0xff] }
  0xd5   :  { %v1008_v8 = vadd.f32 %v1007_v23, %v2560_v1  ;;  %v2578_v1 = vld [vmem:[#allocation43_spill] sm:$0xff] }
  0xd7   :  { %v1009_v16 = vadd.f32 %v1008_v8, %v2561_v44  ;;  %v2579_v8 = vld [vmem:[#allocation44_spill] sm:$0xff] }
  0xd9   :  { %v1010_v42 = vadd.f32 %v1009_v16, %v1740_v29 }
  0xdb   :  { %v1011_v46 = vadd.f32 %v1010_v42, %v2562_v24  ;;  %v2580_v24 = vld [vmem:[#allocation45_spill] sm:$0xff] }
  0xdd   :  { %v1012_v35 = vadd.f32 %v1011_v46, %v2563_v2  ;;  %v2581_v46 = vld [vmem:[#allocation46_spill] sm:$0xff] }
  0xdf   :  { %v1013_v9 = vadd.f32 %v1012_v35, %v2564_v56  ;;  %v2582_v35 = vld [vmem:[#allocation47_spill] sm:$0xff] }
  0xe1   :  { %v1014_v32 = vadd.f32 %v1013_v9, %v2565_v33  ;;  %v2583_v9 = vld [vmem:[#allocation48_spill] sm:$0xff]  ;;  %v2584_v33 = vld [vmem:[#allocation49_spill] sm:$0xff] }
  0xe3   :  { %v1015_v34 = vadd.f32 %v1014_v32, %v2566_v21 }
  0xe5   :  { %v1016_v41 = vadd.f32 %v1015_v34, %v2567_v10  ;;  %v2585_v10 = vld [vmem:[#allocation50_spill] sm:$0xff] }
  0xe7   :  { %v1017_v40 = vadd.f32 %v1016_v41, %v2568_v15  ;;  %v2586_v41 = vld [vmem:[#allocation51_spill] sm:$0xff] }
  0xe9   :  { %v1018_v20 = vadd.f32 %v1017_v40, %v1804_v22  ;;  %v2587_v40 = vld [vmem:[#allocation52_spill] sm:$0xff] }
  0xeb   :  { %v1019_v11 = vadd.f32 %v1018_v20, %v2569_v48  ;;  %v2588_v48 = vld [vmem:[#allocation53_spill] sm:$0xff] }
  0xed   :  { %v1020_v29 = vadd.f32 %v1019_v11, %v2570_v53  ;;  %v2589_v11 = vld [vmem:[#allocation54_spill] sm:$0xff] }
  0xef   :  { %v1021_v39 = vadd.f32 %v1020_v29, %v2571_v4 }
  0xf1   :  { %v1022_v12 = vadd.f32 %v1021_v39, %v1836_v17  ;;  %v2590_v39 = vld [vmem:[#allocation55_spill] sm:$0xff] }
  0xf3   :  { %v1023_v54 = vadd.f32 %v1022_v12, %v2572_v3  ;;  %v2591_v12 = vld [vmem:[#allocation56_spill] sm:$0xff]  ;;  %v2592_v3 = vld [vmem:[#allocation57_spill] sm:$0xff] }
  0xf5   :  { %v1024_v5 = vadd.f32 %v1023_v54, %v2573_v62 }
  0xf7   :  { %v1025_v60 = vadd.f32 %v1024_v5, %v2574_v55  ;;  %v2593_v5 = vld [vmem:[#allocation58_spill] sm:$0xff] }
  0xf9   :  { %v1026_v7 = vadd.f32 %v1025_v60, %v1865_v37 }
  0xfb   :  { %v1027_v49 = vadd.f32 %v1026_v7, %v1870_v36 }
  0xfd   :  { %v1028_v22 = vadd.f32 %v1027_v49, %v2575_v6 }
  0xff   :  { %v1029_v45 = vadd.f32 %v1028_v22, %v2576_v26  ;;  %v2594_v26 = vld [vmem:[#allocation59_spill] sm:$0xff] }
 0x101   :  { %v1030_v51 = vadd.f32 %v1029_v45, %v1894_v14  ;;  %v2595_v45 = vld [vmem:[#allocation60_spill] sm:$0xff] }
 0x103   :  { %v1031_v23 = vadd.f32 %v1030_v51, %v2577_v59  ;;  %v2596_v59 = vld [vmem:[#allocation61_spill] sm:$0xff] }
 0x105   :  { %v1032_v17 = vadd.f32 %v1031_v23, %v2578_v1  ;;  %v2597_v23 = vld [vmem:[#allocation62_spill] sm:$0xff] }
 0x107   :  { %v1033_v44 = vadd.f32 %v1032_v17, %v2579_v8 }
 0x109   :  { %v1034_v16 = vadd.f32 %v1033_v44, %v1923_v43 }
 0x10b   :  { %v1035_v42 = vadd.f32 %v1034_v16, %v1928_v50 }
 0x10d   :  { %v1036_v37 = vadd.f32 %v1035_v42, %v2580_v24 }
 0x10f   :  { %v1037_v36 = vadd.f32 %v1036_v37, %v2581_v46 }
 0x111   :  { %v1038_v2 = vadd.f32 %v1037_v36, %v1952_v13 }
 0x113   :  { %v1039_v56 = vadd.f32 %v1038_v2, %v2582_v35 }
 0x115   :  { %v1040_v14 = vadd.f32 %v1039_v56, %v2583_v9 }
 0x117   :  { %v1041_v32 = vadd.f32 %v1040_v14, %v2584_v33 }
 0x119   :  { %v1042_v21 = vadd.f32 %v1041_v32, %v1981_v52 }
 0x11b   :  { %v1043_v34 = vadd.f32 %v1042_v21, %v1986_v0 }
 0x11d   :  { %v1044_v43 = vadd.f32 %v1043_v34, %v2585_v10 }
 0x11f   :  { %v1045_v50 = vadd.f32 %v1044_v43, %v2586_v41 }
 0x121   :  { %v1046_v15 = vadd.f32 %v1045_v50, %v2010_v27 }
 0x123   :  { %v1047_v20 = vadd.f32 %v1046_v15, %v2587_v40 }
 0x125   :  { %v1048_v13 = vadd.f32 %v1047_v20, %v2588_v48 }
 0x127   :  { %v1049_v53 = vadd.f32 %v1048_v13, %v2589_v11 }
 0x129   :  { %v1050_v29 = vadd.f32 %v1049_v53, %v2039_v61 }
 0x12b   :  { %v1051_v4 = vadd.f32 %v1050_v29, %v2044_v31 }
 0x12d   :  { %v1052_v52 = vadd.f32 %v1051_v4, %v2590_v39 }
 0x12f   :  { %v1053_v0 = vadd.f32 %v1052_v52, %v2591_v12 }
 0x131   :  { %v1054_v54 = vadd.f32 %v1053_v0, %v2592_v3 }
 0x133   :  { %v1055_v62 = vadd.f32 %v1054_v54, %v2073_v58 }
 0x135   :  { %v1056_v27 = vadd.f32 %v1055_v62, %v2078_v30 }
 0x137   :  { %v1057_v55 = vadd.f32 %v1056_v27, %v2593_v5 }
 0x139   :  { %v1058_v60 = vadd.f32 %v1057_v55, %v2091_v57 }
 0x13b   :  { %v1059_v7 = vadd.f32 %v1058_v60, %v2096_v63 }
 0x13d   :  { %v1060_v61 = vadd.f32 %v1059_v7, %v2101_v47  ;;  %v1073_v47 = vstv %s2388_s2 }
 0x13f   :  { %v1061_v31 = vadd.f32 %v1060_v61, %v2106_v18 }
 0x141   :  { %v1062_v49 = vadd.f32 %v1061_v31, %v2111_v28 }
 0x143   :  { %v1063_v6 = vadd.f32 %v1062_v49, %v2116_v38 }
 0x145   :  { %v1064_v22 = vadd.f32 %v1063_v6, %v2121_v25 }
 0x147   :  { %v1065_v58 = vadd.f32 %v1064_v22, %v2126_v19 }
 0x149   :  { %v1066_v30 = vadd.f32 %v1065_v58, %v2594_v26 }
 0x14b   :  { %v1067_v51 = vadd.f32 %v1066_v30, %v2595_v45 }
 0x14d   :  { %v1068_v57 = vadd.f32 %v1067_v51, %v2596_v59 }
 0x14f   :  { %v1069_v63 = vadd.f32 %v1068_v57, %v2597_v23 }
 0x151   :  { %1070 = vadd.xlane.f32.xlu0 %v1069_v63 }
 0x1da   :  { %v1071_v18 = vpop.xlane.xlu0 %1070 }
 0x1db   :  { %v1074_v28 = vadd.f32 %v1073_v47, %v1071_v18 }
 0x1dd   :  { %v1075_v38 = vsub.f32 0.0, %v1074_v28 }
 0x1df   :  { %v1076_v1 = vmul.f32 1.442695, %v1075_v38 }
 0x1e1   :  { %1086 = vpow2.f32 %v1076_v1 }
 0x1ee   :  { %v1087_v25 = vpop.eup %1086 }
 0x1ef   :  { %v1078_v19 = vadd.f32 1.0, %v1087_v25 }
 0x1f1   :  { %1088 = vrcp.f32 %v1078_v19 }
 0x1fe   :  { %v1089_v17 = vpop.eup %1088 }
 0x1ff   :  { %1081 = vst.msk [vmem:[%s2389_s3] sm:$0xff] %vm1080_vm0, %v1089_v17 }

</bundles_post_ra>
